<compile_context>
chip_gen: v7x
topology: tpu7x:2x2x1
jax: 0.10.0
libtpu: 0.0.40
codegen_flags: <defaults>
</compile_context>

<pallas_src>
import numpy as np
import jax
import jax.numpy as jnp
from jax.experimental import pallas as pl
from jax.experimental.pallas import tpu as pltpu


# ---------------------------------------------------------------------------
# Static index computation (mirror of ChannelPaddingLayer.calculate_forward_mask)
# ---------------------------------------------------------------------------
def calculate_forward_mask(in_channels_mask, out_channels_mask):
    in_m = np.asarray(in_channels_mask, dtype=bool)
    out_m = np.asarray(out_channels_mask, dtype=bool)
    conv_forward_mask = np.zeros(out_m.shape, dtype=bool)
    conv_forward_mask[in_m] = True
    actual_conv_forward_mask = conv_forward_mask[out_m]
    actual_conv_forward_indices = np.nonzero(actual_conv_forward_mask)[0]
    actual_conv_out_channels = actual_conv_forward_mask.shape[0]
    return actual_conv_out_channels, actual_conv_forward_indices


# ---------------------------------------------------------------------------
# Small static helpers
# ---------------------------------------------------------------------------
def _vmem_capacity_bytes():
    try:
        info = pltpu.get_tpu_info()
        cap = getattr(info, "vmem_capacity_bytes", None)
        if cap:
            return int(cap)
    except Exception:
        pass
    return 64 * 2**20          # conservative (v7x-sized) default


def _divisors(n):
    out, d = set(), 1
    while d * d <= n:
        if n % d == 0:
            out.add(d)
            out.add(n // d)
        d += 1
    return sorted(out)


def _largest_divisor_leq(n, cap):
    cap = max(1, min(n, int(cap)))
    for d in range(cap, 0, -1):
        if n % d == 0:
            return d
    return 1


def _choose_spatial_layout(HW):
    """Factor H*W into (S, lane) so the (sublane, lane) layout stays dense."""
    if HW % 128 == 0:
        return HW // 128, 128      # fully dense lanes + max spatial-split room
    best, best_score = (1, HW), -1.0
    for lane in _divisors(HW):
        S = HW // lane
        lane_util = lane / (-(-lane // 128) * 128)
        sub_util = 1.0 if S >= 8 else S / 8.0
        score = lane_util * sub_util
        if score > best_score + 1e-9 or (abs(score - best_score) <= 1e-9
                                         and lane > best[1]):
            best, best_score = (S, lane), score
    return best


def _build_tables(C_in, C_out, indices):
    """src/valid lookup tables + contiguous copy/zero segments (all static)."""
    src = np.zeros((C_out,), dtype=np.int32)
    valid = np.zeros((C_out,), dtype=np.int32)
    for pos, c in enumerate(indices):
        src[int(c)] = pos
        valid[int(c)] = 1
    # Contiguous runs of valid output channels map to contiguous input channels
    # (indices are sorted), so the scatter decomposes into a few big copies
    # plus zero fills of the gaps.
    segments, c = [], 0
    while c < C_out:
        start, v = c, bool(valid[c])
        while c < C_out and bool(valid[c]) == v:
            c += 1
        if v:
            segments.append(("copy", start, int(src[start]), c - start))
        else:
            segments.append(("zero", start, 0, c - start))
    return src, valid, segments


# ---------------------------------------------------------------------------
# Kernels
# ---------------------------------------------------------------------------
def _make_static_kernel(segments):
    """Scatter statically unrolled over contiguous channel runs (all-static slices)."""
    def kernel(x_ref, o_ref):
        n_blk, _, s_blk, lane = o_ref.shape
        for kind, dst, src0, length in segments:
            if kind == "copy":
                o_ref[:, dst:dst + length] = x_ref[:, src0:src0 + length]
            else:
                o_ref[:, dst:dst + length] = jnp.zeros(
                    (n_blk, length, s_blk, lane), o_ref.dtype)
    return kernel


def _make_dynamic_kernel(c_grp):
    """Per-channel scatter driven by SMEM src/valid tables (scalar prefetch)."""
    def kernel(src_ref, valid_ref, x_ref, o_ref):
        n_blk, _, s_blk, lane = o_ref.shape
        c0 = pl.program_id(2) * c_grp
        zero = jnp.zeros((n_blk, 1, s_blk, lane), o_ref.dtype)  # hoisted

        @pl.loop(0, c_grp)
        def _(j):
            c = c0 + j

            @pl.when(valid_ref[c] != 0)
            def _copy():
                o_ref[:, pl.ds(j, 1)] = x_ref[:, pl.ds(src_ref[c], 1)]

            @pl.when(valid_ref[c] == 0)
            def _zero():
                o_ref[:, pl.ds(j, 1)] = zero

    return kernel


_MAX_STATIC_SEGMENTS = 64


# ---------------------------------------------------------------------------
# Wrapper
# ---------------------------------------------------------------------------
def channel_padding_forward(x, conv_out_channels, conv_forward_indices, *,
                            max_group_channels=None, force_dynamic=False):
    """x: (N, C_in, H, W) -> (N, conv_out_channels, H, W)."""
    N, C_in, H, W = x.shape
    C_out = int(conv_out_channels)
    HW = H * W
    indices = np.asarray(conv_forward_indices, dtype=np.int64).reshape(-1)

    if C_out == 0:
        return jnp.zeros((N, 0, H, W), dtype=x.dtype)
    if C_in == 0 or indices.size == 0 or N == 0 or HW == 0:
        return jnp.zeros((N, C_out, H, W), dtype=x.dtype)
    assert indices.size == C_in, "len(conv_forward_indices) must equal x.shape[1]"

    src, valid, segments = _build_tables(C_in, C_out, indices)

    # ---- lane-dense spatial layout (free reshape, no transposes) -------------
    S, lane = _choose_spatial_layout(HW)
    x_k = x.reshape(N, C_in, S, lane)

    # ---- generation-aware block sizing ----------------------------------------
    itemsize = jnp.dtype(x.dtype).itemsize
    s_min = 8 * (4 // itemsize)              # 8 rows f32, 16 bf16, 32 int8/fp8
    s_unit = S if S < s_min else s_min       # minimal legal spatial granule

    vmem_cap = _vmem_capacity_bytes()
    per_step_budget = int(0.225 * vmem_cap)  # in + out bytes per grid step

    c_cap = C_out if max_group_channels is None else max(1, int(max_group_channels))
    c_grp = _largest_divisor_leq(C_out, c_cap)

    def rows_budget(cg):                      # budget in units of (n * s) rows
        return max(1, per_step_budget // ((C_in + cg) * lane * itemsize))

    if rows_budget(c_grp) < s_unit and c_grp > 1:
        # All channels at the minimal (n=1, s=s_unit) tile overflow the budget:
        # group output channels (the input block keeps all C_in channels).
        c_fit = per_step_budget // (s_unit * lane * itemsize) - C_in
        c_grp = _largest_divisor_leq(C_out, max(1, min(c_fit, c_cap)))
        # TODO(synk): if C_in alone still blows the budget, input-channel
        # windowing via a scalar-prefetched index map would be needed; we rely
        # on the clamped vmem_limit below in that extreme case.

    rows = rows_budget(c_grp)
    n_blk = _largest_divisor_leq(N, max(1, rows // s_unit))
    s_cap = max(s_unit, rows // n_blk)
    s_blk = S if s_cap >= S else max(s_min, (s_cap // s_min) * s_min)

    n_blocks = N // n_blk
    s_blocks = (S + s_blk - 1) // s_blk       # cdiv: edge block masked by Pallas
    groups = C_out // c_grp

    block_bytes = n_blk * s_blk * (C_in + c_grp) * lane * itemsize
    vmem_limit = int(min(int(0.85 * vmem_cap),
                         max(32 * 2**20, 2 * block_bytes + 8 * 2**20)))

    cost = pl.CostEstimate(flops=0, transcendentals=0,
                           bytes_accessed=int((C_in + C_out) * N * HW * itemsize))

    use_static = (not force_dynamic
                  and c_grp == C_out
                  and len(segments) <= _MAX_STATIC_SEGMENTS)

    if use_static:
        out_k = pl.pallas_call(
            _make_static_kernel(segments),
            out_shape=jax.ShapeDtypeStruct((N, C_out, S, lane), x.dtype),
            grid_spec=pltpu.PrefetchScalarGridSpec(
                num_scalar_prefetch=0,
                grid=(n_blocks, s_blocks),
                in_specs=[pl.BlockSpec((n_blk, C_in, s_blk, lane),
                                       lambda n, s: (n, 0, s, 0))],
                out_specs=pl.BlockSpec((n_blk, C_out, s_blk, lane),
                                       lambda n, s: (n, 0, s, 0))),
            compiler_params=pltpu.CompilerParams(
                dimension_semantics=("parallel", "parallel"),
                vmem_limit_bytes=vmem_limit),
            cost_estimate=cost,
        )(x_k)
    else:
        out_k = pl.pallas_call(
            _make_dynamic_kernel(c_grp),
            out_shape=jax.ShapeDtypeStruct((N, C_out, S, lane), x.dtype),
            grid_spec=pltpu.PrefetchScalarGridSpec(
                num_scalar_prefetch=2,
                grid=(n_blocks, s_blocks, groups),
                in_specs=[pl.BlockSpec((n_blk, C_in, s_blk, lane),
                                       lambda n, s, g, src, valid: (n, 0, s, 0))],
                out_specs=pl.BlockSpec((n_blk, c_grp, s_blk, lane),
                                       lambda n, s, g, src, valid: (n, g, s, 0))),
            compiler_params=pltpu.CompilerParams(
                # groups innermost + "arbitrary": the input block index is
                # group-invariant, so its DMA is reused across groups; n and s
                # stay "parallel" for megacore sharding on v7x.
                dimension_semantics=("parallel", "parallel", "arbitrary"),
                vmem_limit_bytes=vmem_limit),
            cost_estimate=cost,
        )(jnp.asarray(src), jnp.asarray(valid), x_k)

    # Free reshape back to NCHW (contiguous trailing dims only).
    return out_k.reshape(N, C_out, H, W)


# ---------------------------------------------------------------------------
# Tests
# ---------------------------------------------------------------------------
def _reference(x, C_out, indices):
    N, _, H, W = x.shape
    ref = jnp.zeros((N, C_out, H, W), dtype=x.dtype)
    return ref.at[:, jnp.asarray(np.asarray(indices, dtype=np.int32))].set(x)


def _run_case(in_mask, out_mask, N, H, W, dtype, **kwargs):
    C_out, indices = calculate_forward_mask(in_mask, out_mask)
    C_in = int(len(indices))
    key = jax.random.PRNGKey(0)
    x = jax.random.normal(key, (N, C_in, H, W), dtype=jnp.float32).astype(dtype)
    out = channel_padding_forward(x, C_out, indices, **kwargs)
    out = jax.block_until_ready(out)
    ref = _reference(x, C_out, indices)
    assert out.shape == (N, C_out, H, W)
    assert out.dtype == x.dtype
    np.testing.assert_array_equal(np.asarray(out.astype(jnp.float32)),
                                  np.asarray(ref.astype(jnp.float32)))


if __name__ == "__main__":
    in_mask = np.array([True, False, True, True, False, False, True, False])
    out_mask = np.array([True, True, True, True, False, True, True, False])

    # 1) Main path: H*W % 128 == 0, channel-folded static run-unrolled scatter.
    _run_case(in_mask, out_mask, N=2, H=16, W=16, dtype=jnp.float32)

    # 2) Grouped-channel dynamic path (SMEM src/valid tables), forced.
    _run_case(in_mask, out_mask, N=2, H=16, W=16, dtype=jnp.float32,
              force_dynamic=True, max_group_channels=3)

    # 3) H*W % 128 != 0 layout fallback + bf16 sublane packing.
    in_mask3 = np.array([True, False, True, True, False,
                         False, True, False, True, False])
    out_mask3 = np.array([True, True, True, True, False,
                          True, True, False, True, True])
    _run_case(in_mask3, out_mask3, N=2, H=14, W=14, dtype=jnp.bfloat16)

    print("KERNEL_OK")
</pallas_src>

<mosaic_0001>
module attributes {stable_mosaic.version = 11 : i64} {
  func.func @kernel(%arg0: i32, %arg1: i32, %arg2: memref<2x4x2x128xf32, #tpu.memory_space<vmem>>, %arg3: memref<2x6x2x128xf32, #tpu.memory_space<vmem>>) attributes {dimension_semantics = [#tpu.dimension_semantics<parallel>, #tpu.dimension_semantics<parallel>], iteration_bounds = array<i64: 1, 1>, scalar_prefetch = 0 : i64, scratch_operands = 0 : i64, tpu.core_type = #tpu.core_type<tc>, window_params = [{transform_indices = @transform_0, window_bounds = array<i64: 2, 4, 2, 128>}, {transform_indices = @transform_1, window_bounds = array<i64: 2, 6, 2, 128>}]} {
    %c0 = arith.constant 0 : index
    %c0_0 = arith.constant 0 : index
    %c0_1 = arith.constant 0 : index
    %c0_2 = arith.constant 0 : index
    %0 = vector.load %arg2[%c0, %c0_0, %c0_1, %c0_2] : memref<2x4x2x128xf32, #tpu.memory_space<vmem>>, vector<2x1x2x128xf32>
    %c0_3 = arith.constant 0 : index
    %c0_4 = arith.constant 0 : index
    %c0_5 = arith.constant 0 : index
    %c0_6 = arith.constant 0 : index
    %1 = vector.load %arg3[%c0_3, %c0_4, %c0_5, %c0_6] : memref<2x6x2x128xf32, #tpu.memory_space<vmem>>, vector<2x1x2x128xf32>
    tpu.vector_store %arg3[%c0_3, %c0_4, %c0_5, %c0_6], %0 {strides = array<i32>} : memref<2x6x2x128xf32, #tpu.memory_space<vmem>>, vector<2x1x2x128xf32>,
    %cst = arith.constant 0.000000e+00 : f32
    %2 = vector.broadcast %cst : f32 to vector<2x1x2x128xf32>
    %c0_7 = arith.constant 0 : index
    %c1 = arith.constant 1 : index
    %c0_8 = arith.constant 0 : index
    %c0_9 = arith.constant 0 : index
    %3 = vector.load %arg3[%c0_7, %c1, %c0_8, %c0_9] : memref<2x6x2x128xf32, #tpu.memory_space<vmem>>, vector<2x1x2x128xf32>
    tpu.vector_store %arg3[%c0_7, %c1, %c0_8, %c0_9], %2 {strides = array<i32>} : memref<2x6x2x128xf32, #tpu.memory_space<vmem>>, vector<2x1x2x128xf32>,
    %c0_10 = arith.constant 0 : index
    %c1_11 = arith.constant 1 : index
    %c0_12 = arith.constant 0 : index
    %c0_13 = arith.constant 0 : index
    %4 = vector.load %arg2[%c0_10, %c1_11, %c0_12, %c0_13] : memref<2x4x2x128xf32, #tpu.memory_space<vmem>>, vector<2x2x2x128xf32>
    %c0_14 = arith.constant 0 : index
    %c2 = arith.constant 2 : index
    %c0_15 = arith.constant 0 : index
    %c0_16 = arith.constant 0 : index
    %5 = vector.load %arg3[%c0_14, %c2, %c0_15, %c0_16] : memref<2x6x2x128xf32, #tpu.memory_space<vmem>>, vector<2x2x2x128xf32>
    tpu.vector_store %arg3[%c0_14, %c2, %c0_15, %c0_16], %4 {strides = array<i32>} : memref<2x6x2x128xf32, #tpu.memory_space<vmem>>, vector<2x2x2x128xf32>,
    %cst_17 = arith.constant 0.000000e+00 : f32
    %6 = vector.broadcast %cst_17 : f32 to vector<2x1x2x128xf32>
    %c0_18 = arith.constant 0 : index
    %c4 = arith.constant 4 : index
    %c0_19 = arith.constant 0 : index
    %c0_20 = arith.constant 0 : index
    %7 = vector.load %arg3[%c0_18, %c4, %c0_19, %c0_20] : memref<2x6x2x128xf32, #tpu.memory_space<vmem>>, vector<2x1x2x128xf32>
    tpu.vector_store %arg3[%c0_18, %c4, %c0_19, %c0_20], %6 {strides = array<i32>} : memref<2x6x2x128xf32, #tpu.memory_space<vmem>>, vector<2x1x2x128xf32>,
    %c0_21 = arith.constant 0 : index
    %c3 = arith.constant 3 : index
    %c0_22 = arith.constant 0 : index
    %c0_23 = arith.constant 0 : index
    %8 = vector.load %arg2[%c0_21, %c3, %c0_22, %c0_23] : memref<2x4x2x128xf32, #tpu.memory_space<vmem>>, vector<2x1x2x128xf32>
    %c0_24 = arith.constant 0 : index
    %c5 = arith.constant 5 : index
    %c0_25 = arith.constant 0 : index
    %c0_26 = arith.constant 0 : index
    %9 = vector.load %arg3[%c0_24, %c5, %c0_25, %c0_26] : memref<2x6x2x128xf32, #tpu.memory_space<vmem>>, vector<2x1x2x128xf32>
    tpu.vector_store %arg3[%c0_24, %c5, %c0_25, %c0_26], %8 {strides = array<i32>} : memref<2x6x2x128xf32, #tpu.memory_space<vmem>>, vector<2x1x2x128xf32>,
    return
  }
  func.func @transform_0(%arg0: i32, %arg1: i32) -> (i32, i32, i32, i32) {
    %c0_i32 = arith.constant 0 : i32
    %c0_i32_0 = arith.constant 0 : i32
    %c0_i32_1 = arith.constant 0 : i32
    return %arg0, %c0_i32, %arg1, %c0_i32_0 : i32, i32, i32, i32
  }
  func.func @transform_1(%arg0: i32, %arg1: i32) -> (i32, i32, i32, i32) {
    %c0_i32 = arith.constant 0 : i32
    %c0_i32_0 = arith.constant 0 : i32
    %c0_i32_1 = arith.constant 0 : i32
    return %arg0, %c0_i32, %arg1, %c0_i32_0 : i32, i32, i32, i32
  }
}

</mosaic_0001>

<bundles_post_ra>
// kernel: tpu_custom_call.1
= control target key start
LH: loop header
LB: loop body
LE: loop exit
PB: predicated region body
PF: predicated region fallthrough
CT: control target
= control target key end

     0   :  { %6 = vsyncpa [#allocation3], 0  ;;  %s164_s0 = inlined_call_operand.hbm [shape: f32[2,4,2,128], index: 0, kind: input, shape index: {}]   ;;  %s165_s1 = inlined_call_operand.hbm [shape: f32[2,6,2,128], index: 1, kind: output, shape index: {}]  }
   0x1   :  { %7 = vsyncpa [#allocation4], 0  ;;  %s119_s6 = smov [#allocation2]   ;;  %s71_s10 = scalar_lea.hbm %s164_s0, 256 }
   0x2   :  { %s13_s7 = sshll.u32 %s119_s6, 4  ;;  %p72_p0 = scmp.ne.s32.totalorder %s164_s0, %s71_s10  ;;  %s14_s7 = int_to_ptr.vmem [resolvable:$true] %s13_s7 }
   0x3   :  { %p75_p1 = scmp.lt.u32.totalorder %s71_s10, %s164_s0 }
   0x5   :  { %p77_p2 = pnand %p75_p1, %p72_p0 }
   0x7   :  { %80 = shalt.err (!%p77_p2)
}
   0x8   :  { %s81_s15 = scalar_lea.vmem %s14_s7, 256  ;;  %p86_p4 = scmp.lt.s32.totalorder %s14_s7, %s14_s7 }
   0x9   :  { %p82_p3 = scmp.ne.s32.totalorder %s14_s7, %s81_s15  ;;  %p87_p5 = scmp.lt.s32.totalorder %s81_s15, %s81_s15 }
   0xb   :  { %p88_p6 = por %p87_p5, %p86_p4 }
   0xd   :  { %p89_p7 = pnand %p88_p6, %p82_p3 }
   0xf   :  { %92 = shalt.err (!%p89_p7)
}
  0x10   :  { %s120_s16 = smov 32   ;;  %s121_s17 = smov 2  }
  0x11   :  { %19 = dma.hbm_to_vmem [thread:$0]  %s164_s0, 256, %s14_s7, [#allocation3], %s120_s16, %s120_s16, %s121_s17  }
  0x12   :  { %115 = dma.done.wait [#allocation3], 256  }
  0x13   :  { %116 = vsyncadd [#allocation3], 4294967040  ;;  %v122_v0 = vmov 0.0   ;;  %s123_s20 = smov [#allocation5]   ;;  %v23_v1 = vld [vmem:[#allocation2] sm:$0x3] }
  0x14   :  { %28 = vst [vmem:[#allocation5 + $0x2] sm:$0x3] %v122_v0  ;;  %29 = vst [vmem:[#allocation5 + $0xe] sm:$0x3] %v122_v0  ;;  %s54_s21 = sshll.u32 %s123_s20, 4  ;;  %s55_s21 = int_to_ptr.vmem [resolvable:$true] %s54_s21 }
  0x15   :  { %41 = vst [vmem:[#allocation5 + $0x8] sm:$0x3] %v122_v0  ;;  %42 = vst [vmem:[#allocation5 + $0x14] sm:$0x3] %v122_v0  ;;  %v24_v2 = vld [vmem:[#allocation2 + $0x6] sm:$0xf]   ;;  %p98_p9 = scmp.lt.s32.totalorder %s55_s21, %s55_s21 }
  0x16   :  { %v31_v3 = vld [vmem:[#allocation2 + $0x2] sm:$0xf]   ;;  %25 = vst [vmem:[#allocation5] sm:$0x3] %v23_v1  ;;  %26 = vst [vmem:[#allocation5 + $0xa] sm:$0xf] %v24_v2  }
  0x17   :  { %36 = vst [vmem:[#allocation5 + $0x4] sm:$0xf] %v31_v3   ;;  %v33_v4 = vld [vmem:[#allocation2 + $0xa] sm:$0xf]   ;;  %v45_v5 = vld [vmem:[#allocation2 + $0xe] sm:$0x3] }
  0x18   :  { %38 = vst [vmem:[#allocation5 + $0x10] sm:$0xf] %v33_v4   ;;  %48 = vst [vmem:[#allocation5 + $0x16] sm:$0x3] %v45_v5  ;;  %s93_s0 = scalar_lea.vmem %s55_s21, 384 }
  0x19   :  { %p94_p8 = scmp.ne.s32.totalorder %s55_s21, %s93_s0  ;;  %p99_p10 = scmp.lt.s32.totalorder %s93_s0, %s93_s0 }
  0x1b   :  { %p100_p11 = por %p99_p10, %p98_p9 }
  0x1d   :  { %p101_p12 = pnand %p100_p11, %p94_p8 }
  0x1f   :  { %104 = shalt.err (!%p101_p12)
}
  0x20   :  { %s105_s24 = scalar_lea.hbm %s165_s1, 384 }
  0x21   :  { %p106_p13 = scmp.ne.s32.totalorder %s165_s1, %s105_s24  ;;  %p109_p0 = scmp.lt.u32.totalorder %s105_s24, %s165_s1 }
  0x23   :  { %p111_p1 = pnand %p109_p0, %p106_p13 }
  0x25   :  { %114 = shalt.err (!%p111_p1)
}
  0x26   :  { %60 = dma.vmem_to_hbm [thread:$0]  %s55_s21, 384, %s165_s1, [#allocation4], %s120_s16, %s120_s16, %s121_s17  }
  0x27   :  { %117 = dma.done.wait [#allocation4], 384  }
  0x28   :  { %118 = vsyncadd [#allocation4], 4294966912 }
  0x29   :  { %64 = vsyncpa [#allocation3], 1 }
  0x2a   :  { %65 = vsyncpa [#allocation4], 1 }

</bundles_post_ra>
